<compile_context>
chip_gen: v7x
topology: tpu7x:2x2x1
jax: 0.10.0
libtpu: 0.0.40
codegen_flags: <defaults>
</compile_context>

<pallas_src>
import functools

import jax
import jax.numpy as jnp
from jax.experimental import pallas as pl
from jax.experimental.pallas import tpu as pltpu


# ---------------------------------------------------------------------------
# Antialiased bilinear resize weight matrix (PIL / torchvision formula)
# ---------------------------------------------------------------------------
def _resize_weight_matrix(in_size: int, out_size: int) -> jnp.ndarray:
    """Dense (out_size, in_size) f32 matrix reproducing torchvision's
    bilinear + antialias=True resize along one dimension."""
    scale = in_size / out_size
    support_scale = max(scale, 1.0)       # antialias: widen kernel when downscaling
    support = 1.0 * support_scale         # bilinear filter support = 1

    i = jnp.arange(out_size, dtype=jnp.float32)
    center = (i + 0.5) * scale            # (out,)
    xmin = jnp.clip(jnp.floor(center - support + 0.5), 0, in_size).astype(jnp.int32)
    xmax = jnp.clip(jnp.floor(center + support + 0.5), 0, in_size).astype(jnp.int32)

    j = jnp.arange(in_size, dtype=jnp.float32)                      # (in,)
    x = (j[None, :] + 0.5 - center[:, None]) / support_scale        # (out, in)
    w = jnp.maximum(0.0, 1.0 - jnp.abs(x))                          # triangle filter
    idx = jnp.arange(in_size)[None, :]
    in_window = (idx >= xmin[:, None]) & (idx < xmax[:, None])
    w = jnp.where(in_window, w, 0.0)
    w = w / jnp.sum(w, axis=1, keepdims=True)                       # rows sum to 1
    return w.astype(jnp.float32)


# ---------------------------------------------------------------------------
# Fused separable-resize kernel: both MXU passes on a block of planes, in VMEM
# ---------------------------------------------------------------------------
def _make_resize_kernel(tp: int):
    def kernel(x_ref, wh_ref, wwt_ref, o_ref):
        # x_ref:   (tp, H, W)       input planes (any float dtype)
        # wh_ref:  (out_h, H) f32   height weights (resident, DMA'd once)
        # wwt_ref: (W, out_w) f32   width weights, pre-transposed (resident)
        # o_ref:   (tp, out_h, out_w) in the output dtype
        wwt = wwt_ref[...]
        wh = wh_ref[...]
        # tp is small and static: unrolled per-plane loop of two 2-D MXU
        # matmuls; the (H, out_w) intermediate never leaves VMEM/vregs.
        for p in range(tp):
            xp = x_ref[p].astype(jnp.float32)                               # (H, W)
            t = jnp.dot(xp, wwt, preferred_element_type=jnp.float32)        # (H, out_w)
            y = jnp.dot(wh, t, preferred_element_type=jnp.float32)          # (out_h, out_w)
            o_ref[p] = y.astype(o_ref.dtype)
    return kernel


def _plane_tile(p: int, h: int, w: int, out_h: int, out_w: int,
                in_item: int, out_item: int) -> int:
    """Planes per grid step: a divisor of p, bounded by a v7x-safe VMEM
    budget, kept small enough that the unrolled loop stays short, and chosen
    so the grid has >= 2 steps whenever p >= 2 (both v7x TensorCores busy)."""
    budget = 24 * 1024 * 1024  # double-buffered in/out blocks (v7x: 64 MiB VMEM)
    per_plane = 2 * (h * w * in_item + out_h * out_w * out_item) + h * out_w * 4
    cap = max(1, budget // max(per_plane, 1))
    cap = min(cap, 8)                      # keep the unrolled per-plane loop short
    if p >= 2:
        cap = min(cap, (p + 1) // 2)       # guarantee at least 2 grid steps
    tp = 1
    for d in range(1, cap + 1):            # largest divisor of p not above cap
        if p % d == 0:
            tp = d
    return tp


def _resize_planes(planes, wh, wwt, out_h, out_w):
    """planes: (P, H, W) -> (P, out_h, out_w), same dtype, fused resize."""
    p, h, w = planes.shape
    out_dtype = planes.dtype
    in_item = jnp.dtype(planes.dtype).itemsize
    out_item = jnp.dtype(out_dtype).itemsize
    tp = _plane_tile(p, h, w, out_h, out_w, in_item, out_item)

    flops = 2 * p * h * out_w * (w + out_h)
    bytes_accessed = (p * h * w * in_item
                      + p * out_h * out_w * out_item
                      + (out_h * h + w * out_w) * 4)

    # TODO(synk): for very large resolutions (>~2K px) the full resident
    # weight matrices no longer fit the 64 MiB v7x VMEM; block out_h/out_w
    # (and add a K-reduction axis over H/W) before using this at such sizes.
    return pl.pallas_call(
        _make_resize_kernel(tp),
        out_shape=jax.ShapeDtypeStruct((p, out_h, out_w), out_dtype),
        grid_spec=pltpu.PrefetchScalarGridSpec(
            num_scalar_prefetch=0,
            grid=(p // tp,),
            in_specs=[
                pl.BlockSpec((tp, h, w), lambda i: (i, 0, 0)),
                pl.BlockSpec((out_h, h), lambda i: (0, 0)),     # resident weights
                pl.BlockSpec((w, out_w), lambda i: (0, 0)),     # resident weights
            ],
            out_specs=pl.BlockSpec((tp, out_h, out_w), lambda i: (i, 0, 0)),
        ),
        compiler_params=pltpu.CompilerParams(
            dimension_semantics=("parallel",),   # shard plane blocks over TCs
            vmem_limit_bytes=48 * 1024 * 1024,   # safe on v7x (64 MiB physical)
        ),
        cost_estimate=pl.CostEstimate(
            flops=int(flops), transcendentals=0,
            bytes_accessed=int(bytes_accessed)),
    )(planes, wh, wwt)


@functools.partial(jax.jit, static_argnums=(1, 2))
def _resize_nchw(x, out_h, out_w):
    """Resize a (N, C, H, W) tensor to (N, C, out_h, out_w)."""
    n, c, h, w = x.shape
    wh = _resize_weight_matrix(h, out_h)            # (out_h, H) f32
    wwt = _resize_weight_matrix(w, out_w).T         # (W, out_w) f32, pre-transposed
    planes = x.reshape(n * c, h, w)                 # free metadata reshape, no copy
    # NOTE: output is written in the input dtype; for integer dtypes this
    # truncates (torchvision rounds uint8) -- this module uses float images.
    out = _resize_planes(planes, wh, wwt, out_h, out_w)
    return out.reshape(n, c, out_h, out_w)


# ---------------------------------------------------------------------------
# Module-equivalent wrapper
# ---------------------------------------------------------------------------
class Resize:
    """JAX/Pallas port of the PyTorch Resize augmentation module."""

    def __init__(self, min_size=None, max_size=None):
        self.min_size = min_size
        self.max_size = max_size

    def get_random_size(self, h, w, key):
        if self.min_size is None or self.max_size is None:
            raise ValueError("min_size and max_size must be provided")
        kh, kw = jax.random.split(key)
        # TODO(synk): torch.randint host RNG replaced with jax.random + host
        # int(); every distinct (out_h, out_w) compiles a fresh kernel --
        # bucket sizes (e.g. multiples of 32) in production to bound compiles.
        oh = int(jax.random.randint(kh, (), int(self.min_size * h),
                                    int(self.max_size * h) + 1))
        ow = int(jax.random.randint(kw, (), int(self.min_size * w),
                                    int(self.max_size * w) + 1))
        return (oh, ow)

    def __call__(self, image, mask, size=None, key=None):
        h, w = image.shape[-2], image.shape[-1]
        if size is None:
            output_size = self.get_random_size(h, w, key)
        else:
            output_size = (int(size * h), int(size * w))
        out_h, out_w = output_size
        return (_resize_nchw(image, out_h, out_w),
                _resize_nchw(mask, out_h, out_w))


# ---------------------------------------------------------------------------
if __name__ == "__main__":
    key = jax.random.PRNGKey(0)
    k_img, k_mask = jax.random.split(key)

    N, C, H, W = 2, 4, 16, 16
    image = jax.random.uniform(k_img, (N, C, H, W), dtype=jnp.float32)
    mask = (jax.random.uniform(k_mask, (N, 1, H, W)) > 0.5).astype(jnp.float32)

    resize = Resize(min_size=0.5, max_size=1.5)

    # --- downscale (exercises the antialias / widened-support path) ---------
    size = 0.75
    img_out, mask_out = resize(image, mask, size=size)
    img_out = jax.block_until_ready(img_out)
    mask_out = jax.block_until_ready(mask_out)

    out_h, out_w = int(size * H), int(size * W)
    assert img_out.shape == (N, C, out_h, out_w)
    assert mask_out.shape == (N, 1, out_h, out_w)

    # f32 separable reference (tolerance covers MXU default-precision passes).
    wh = _resize_weight_matrix(H, out_h)
    ww = _resize_weight_matrix(W, out_w)
    ref_img = jnp.einsum("oh,nchw,pw->ncop", wh, image, ww)
    ref_mask = jnp.einsum("oh,nchw,pw->ncop", wh, mask, ww)
    assert jnp.allclose(img_out, ref_img, atol=2e-2, rtol=0)
    assert jnp.allclose(mask_out, ref_mask, atol=2e-2, rtol=0)

    # Constant plane must stay (approximately) constant: filter rows sum to 1.
    ones_img, ones_msk = resize(jnp.ones((N, C, H, W), jnp.float32),
                                jnp.ones((N, 1, H, W), jnp.float32), size=size)
    assert jnp.allclose(jax.block_until_ready(ones_img), 1.0, atol=2e-2)
    assert jnp.allclose(jax.block_until_ready(ones_msk), 1.0, atol=2e-2)

    # --- upscale (plain bilinear support) ------------------------------------
    size_up = 1.25
    img_up, mask_up = resize(image, mask, size=size_up)
    img_up = jax.block_until_ready(img_up)
    mask_up = jax.block_until_ready(mask_up)
    uh, uw = int(size_up * H), int(size_up * W)
    assert img_up.shape == (N, C, uh, uw)
    assert mask_up.shape == (N, 1, uh, uw)
    wh_u = _resize_weight_matrix(H, uh)
    ww_u = _resize_weight_matrix(W, uw)
    ref_up = jnp.einsum("oh,nchw,pw->ncop", wh_u, image, ww_u)
    assert jnp.allclose(img_up, ref_up, atol=2e-2, rtol=0)

    print("KERNEL_OK")
</pallas_src>

<mosaic_0001>
module attributes {stable_mosaic.version = 11 : i64} {
  func.func @kernel(%arg0: i32, %arg1: memref<4x16x16xf32, #tpu.memory_space<vmem>>, %arg2: memref<12x16xf32, #tpu.memory_space<vmem>>, %arg3: memref<16x12xf32, #tpu.memory_space<vmem>>, %arg4: memref<4x12x12xf32, #tpu.memory_space<vmem>>) attributes {dimension_semantics = [#tpu.dimension_semantics<parallel>], iteration_bounds = array<i64: 2>, scalar_prefetch = 0 : i64, scratch_operands = 0 : i64, tpu.core_type = #tpu.core_type<tc>, window_params = [{transform_indices = @transform_0, window_bounds = array<i64: 4, 16, 16>}, {pipeline_mode = #tpu.pipeline_mode<synchronous>, transform_indices = @transform_1, window_bounds = array<i64: 12, 16>}, {pipeline_mode = #tpu.pipeline_mode<synchronous>, transform_indices = @transform_2, window_bounds = array<i64: 16, 12>}, {transform_indices = @transform_3, window_bounds = array<i64: 4, 12, 12>}]} {
    %c0 = arith.constant 0 : index
    %c0_0 = arith.constant 0 : index
    %0 = vector.load %arg3[%c0, %c0_0] : memref<16x12xf32, #tpu.memory_space<vmem>>, vector<16x12xf32>
    %c0_1 = arith.constant 0 : index
    %c0_2 = arith.constant 0 : index
    %1 = vector.load %arg2[%c0_1, %c0_2] : memref<12x16xf32, #tpu.memory_space<vmem>>, vector<12x16xf32>
    %c0_3 = arith.constant 0 : index
    %c0_4 = arith.constant 0 : index
    %c0_5 = arith.constant 0 : index
    %2 = vector.load %arg1[%c0_3, %c0_4, %c0_5] : memref<4x16x16xf32, #tpu.memory_space<vmem>>, vector<1x16x16xf32>
    %3 = vector.shape_cast %2 : vector<1x16x16xf32> to vector<16x16xf32>
    %cst = arith.constant dense<0.000000e+00> : vector<16x12xf32>
    %4 = tpu.matmul %3, %0, %cst {dimension_numbers = #tpu.dot_dimension_numbers<[1], [0], [0], [1], [0, 0, 1, 1], [], []>} : vector<16x16xf32>, vector<16x12xf32>, vector<16x12xf32> -> vector<16x12xf32>
    %cst_6 = arith.constant dense<0.000000e+00> : vector<12x12xf32>
    %5 = tpu.matmul %1, %4, %cst_6 {dimension_numbers = #tpu.dot_dimension_numbers<[1], [0], [0], [1], [0, 0, 1, 1], [], []>} : vector<12x16xf32>, vector<16x12xf32>, vector<12x12xf32> -> vector<12x12xf32>
    %c0_7 = arith.constant 0 : index
    %c0_8 = arith.constant 0 : index
    %c0_9 = arith.constant 0 : index
    %6 = vector.load %arg4[%c0_7, %c0_8, %c0_9] : memref<4x12x12xf32, #tpu.memory_space<vmem>>, vector<1x12x12xf32>
    %7 = vector.shape_cast %6 : vector<1x12x12xf32> to vector<12x12xf32>
    %8 = vector.shape_cast %5 : vector<12x12xf32> to vector<1x12x12xf32>
    tpu.vector_store %arg4[%c0_7, %c0_8, %c0_9], %8 {strides = array<i32>} : memref<4x12x12xf32, #tpu.memory_space<vmem>>, vector<1x12x12xf32>,
    %c1 = arith.constant 1 : index
    %c0_10 = arith.constant 0 : index
    %c0_11 = arith.constant 0 : index
    %9 = vector.load %arg1[%c1, %c0_10, %c0_11] : memref<4x16x16xf32, #tpu.memory_space<vmem>>, vector<1x16x16xf32>
    %10 = vector.shape_cast %9 : vector<1x16x16xf32> to vector<16x16xf32>
    %cst_12 = arith.constant dense<0.000000e+00> : vector<16x12xf32>
    %11 = tpu.matmul %10, %0, %cst_12 {dimension_numbers = #tpu.dot_dimension_numbers<[1], [0], [0], [1], [0, 0, 1, 1], [], []>} : vector<16x16xf32>, vector<16x12xf32>, vector<16x12xf32> -> vector<16x12xf32>
    %cst_13 = arith.constant dense<0.000000e+00> : vector<12x12xf32>
    %12 = tpu.matmul %1, %11, %cst_13 {dimension_numbers = #tpu.dot_dimension_numbers<[1], [0], [0], [1], [0, 0, 1, 1], [], []>} : vector<12x16xf32>, vector<16x12xf32>, vector<12x12xf32> -> vector<12x12xf32>
    %c1_14 = arith.constant 1 : index
    %c0_15 = arith.constant 0 : index
    %c0_16 = arith.constant 0 : index
    %13 = vector.load %arg4[%c1_14, %c0_15, %c0_16] : memref<4x12x12xf32, #tpu.memory_space<vmem>>, vector<1x12x12xf32>
    %14 = vector.shape_cast %13 : vector<1x12x12xf32> to vector<12x12xf32>
    %15 = vector.shape_cast %12 : vector<12x12xf32> to vector<1x12x12xf32>
    tpu.vector_store %arg4[%c1_14, %c0_15, %c0_16], %15 {strides = array<i32>} : memref<4x12x12xf32, #tpu.memory_space<vmem>>, vector<1x12x12xf32>,
    %c2 = arith.constant 2 : index
    %c0_17 = arith.constant 0 : index
    %c0_18 = arith.constant 0 : index
    %16 = vector.load %arg1[%c2, %c0_17, %c0_18] : memref<4x16x16xf32, #tpu.memory_space<vmem>>, vector<1x16x16xf32>
    %17 = vector.shape_cast %16 : vector<1x16x16xf32> to vector<16x16xf32>
    %cst_19 = arith.constant dense<0.000000e+00> : vector<16x12xf32>
    %18 = tpu.matmul %17, %0, %cst_19 {dimension_numbers = #tpu.dot_dimension_numbers<[1], [0], [0], [1], [0, 0, 1, 1], [], []>} : vector<16x16xf32>, vector<16x12xf32>, vector<16x12xf32> -> vector<16x12xf32>
    %cst_20 = arith.constant dense<0.000000e+00> : vector<12x12xf32>
    %19 = tpu.matmul %1, %18, %cst_20 {dimension_numbers = #tpu.dot_dimension_numbers<[1], [0], [0], [1], [0, 0, 1, 1], [], []>} : vector<12x16xf32>, vector<16x12xf32>, vector<12x12xf32> -> vector<12x12xf32>
    %c2_21 = arith.constant 2 : index
    %c0_22 = arith.constant 0 : index
    %c0_23 = arith.constant 0 : index
    %20 = vector.load %arg4[%c2_21, %c0_22, %c0_23] : memref<4x12x12xf32, #tpu.memory_space<vmem>>, vector<1x12x12xf32>
    %21 = vector.shape_cast %20 : vector<1x12x12xf32> to vector<12x12xf32>
    %22 = vector.shape_cast %19 : vector<12x12xf32> to vector<1x12x12xf32>
    tpu.vector_store %arg4[%c2_21, %c0_22, %c0_23], %22 {strides = array<i32>} : memref<4x12x12xf32, #tpu.memory_space<vmem>>, vector<1x12x12xf32>,
    %c3 = arith.constant 3 : index
    %c0_24 = arith.constant 0 : index
    %c0_25 = arith.constant 0 : index
    %23 = vector.load %arg1[%c3, %c0_24, %c0_25] : memref<4x16x16xf32, #tpu.memory_space<vmem>>, vector<1x16x16xf32>
    %24 = vector.shape_cast %23 : vector<1x16x16xf32> to vector<16x16xf32>
    %cst_26 = arith.constant dense<0.000000e+00> : vector<16x12xf32>
    %25 = tpu.matmul %24, %0, %cst_26 {dimension_numbers = #tpu.dot_dimension_numbers<[1], [0], [0], [1], [0, 0, 1, 1], [], []>} : vector<16x16xf32>, vector<16x12xf32>, vector<16x12xf32> -> vector<16x12xf32>
    %cst_27 = arith.constant dense<0.000000e+00> : vector<12x12xf32>
    %26 = tpu.matmul %1, %25, %cst_27 {dimension_numbers = #tpu.dot_dimension_numbers<[1], [0], [0], [1], [0, 0, 1, 1], [], []>} : vector<12x16xf32>, vector<16x12xf32>, vector<12x12xf32> -> vector<12x12xf32>
    %c3_28 = arith.constant 3 : index
    %c0_29 = arith.constant 0 : index
    %c0_30 = arith.constant 0 : index
    %27 = vector.load %arg4[%c3_28, %c0_29, %c0_30] : memref<4x12x12xf32, #tpu.memory_space<vmem>>, vector<1x12x12xf32>
    %28 = vector.shape_cast %27 : vector<1x12x12xf32> to vector<12x12xf32>
    %29 = vector.shape_cast %26 : vector<12x12xf32> to vector<1x12x12xf32>
    tpu.vector_store %arg4[%c3_28, %c0_29, %c0_30], %29 {strides = array<i32>} : memref<4x12x12xf32, #tpu.memory_space<vmem>>, vector<1x12x12xf32>,
    return
  }
  func.func @transform_0(%arg0: i32) -> (i32, i32, i32) {
    %c0_i32 = arith.constant 0 : i32
    %c0_i32_0 = arith.constant 0 : i32
    %c0_i32_1 = arith.constant 0 : i32
    return %arg0, %c0_i32, %c0_i32_0 : i32, i32, i32
  }
  func.func @transform_1(%arg0: i32) -> (i32, i32) {
    %c0_i32 = arith.constant 0 : i32
    %c0_i32_0 = arith.constant 0 : i32
    %c0_i32_1 = arith.constant 0 : i32
    return %c0_i32, %c0_i32_0 : i32, i32
  }
  func.func @transform_2(%arg0: i32) -> (i32, i32) {
    %c0_i32 = arith.constant 0 : i32
    %c0_i32_0 = arith.constant 0 : i32
    %c0_i32_1 = arith.constant 0 : i32
    return %c0_i32, %c0_i32_0 : i32, i32
  }
  func.func @transform_3(%arg0: i32) -> (i32, i32, i32) {
    %c0_i32 = arith.constant 0 : i32
    %c0_i32_0 = arith.constant 0 : i32
    %c0_i32_1 = arith.constant 0 : i32
    return %arg0, %c0_i32, %c0_i32_0 : i32, i32, i32
  }
}

</mosaic_0001>

<bundles_post_ra>
// kernel: _resize_nchw.1
= control target key start
LH: loop header
LB: loop body
LE: loop exit
PB: predicated region body
PF: predicated region fallthrough
CT: control target
= control target key end

     0   :  { %8 = vsyncpa [#allocation3], 0  ;;  %s1359_s0 = inlined_call_operand.hbm [shape: f32[8,16,16], index: 0, kind: input, shape index: {}]   ;;  %s1360_s1 = inlined_call_operand.vmem [shape: f32[12,16], index: 1, kind: input, shape index: {}]   ;;  %s1361_s2 = inlined_call_operand.vmem [shape: f32[16,12], index: 2, kind: input, shape index: {}]   ;;  %s1362_s3 = inlined_call_operand.vmem [shape: f32[8,12,12], index: 3, kind: output, shape index: {}]  }
   0x1   :  { %10 = vsyncpa [#allocation3 + $0x1], 0  ;;  %s1220_s12 = smov 0   ;;  %s1222_s13 = smov 0  }
   0x2   :  { %s1224_s14 = smov 0   ;;  %s1226_s15 = smov 0  }
   0x3 LB: > { %s924_s16 = sadd.s32 4294967295, %s1195_s15   ;;  %s1240_s17 = sadd.s32 1, %s1195_s15   ;;  %s1195_s15 = sphi %s1226_s15, %s1369_s15   ;;  %s1191_s14 = sphi %s1224_s14, %s1368_s14   ;;  %s1187_s13 = sphi %s1222_s13, %s1367_s13   ;;  %s1183_s12 = sphi %s1220_s12, %s1366_s12  }
   0x4   : > { %s20_s18 = ssub.s32 %s1195_s15, %s1240_s17  ;;  %s23_s19 = sadd.s32 1, %s1191_s14 }
   0x5   : > { %p21_p0 = scmp.eq.s32.totalorder %s20_s18, 0  ;;  %p30_p1 = scmp.ne.s32.totalorder %s1191_s14, %s1187_s13 }
   0x6   : > { %p31_p2 = scmp.eq.s32.totalorder %s1195_s15, 0  ;;  %p36_p3 = scmp.ne.s32.totalorder %s1187_s13, %s1183_s12 }
   0x7   : > { %s1250_s20 = scalar_select %p21_p0, %s1191_s14, %s23_s19  }
   0x8   : > { %p32_p4 = por %p31_p2, %p30_p1  ;;  %p37_p5 = scmp.eq.s32.totalorder %s924_s16, 0 }
   0x9   : > { %p1096_p6 = scmp.lt.s32.totalorder %s1195_s15, 2  ;;  %s134_s22 = sand.u32 1, %s1191_s14  }
   0xa   : > { %p1255_p7 = por %p37_p5, %p36_p3  ;;  %s928_s23 = sshll.u32 %s134_s22, 6 }
   0xb   : > { %s968_s24 = sshll.u32 %s1195_s15, 10  ;;  %s138_s28 = scalar_lea.vmem [#allocation2], %s928_s23 }
   0xc   : > { %s1264_s27 = scalar_lea.hbm %s1359_s0, %s968_s24  ;;  %s146_s29 = sshll.u32 %s138_s28, 4  ;;  %s1266_s29 = int_to_ptr.vmem [resolvable:$true] %s146_s29 }
   0xd   : > { %p1268_p8 = pnand %p1096_p6, %p32_p4  ;;  %s1273_s4 = scalar_lea.sflag [#allocation3], %s134_s22 }
   0xe   : > { %s1131_s5 = scalar_lea.hbm %s1264_s27, 1024  ;;  %s1136_s8 = scalar_lea.hbm %s1359_s0, 2048 }
   0xf   : > { %p1132_p10 = scmp.ne.s32.totalorder %s1264_s27, %s1131_s5  ;;  %p1133_p11 = pneg %p1268_p8 }
  0x10   : > { %p1137_p0 = scmp.lt.u32.totalorder %s1264_s27, %s1359_s0  ;;  %p1138_p1 = scmp.lt.u32.totalorder %s1136_s8, %s1131_s5 }
  0x11   : > { %p1134_p12 = pnand %p1133_p11, %p1132_p10  ;;  %p1140_p3 = scmp.lt.u32.totalorder %s1131_s5, %s1264_s27 }
  0x12   : > { %p1139_p2 = por %p1138_p1, %p1137_p0 }
  0x13   : > { %p1135_p13 = pneg %p1134_p12 }
  0x14   : > { %p1141_p4 = por %p1140_p3, %p1139_p2 }
  0x16   : > { %p1142_p5 = pnand %p1141_p4, %p1135_p13 }
  0x18   : > { %1145 = shalt.err (!%p1142_p5)
}
  0x19   : > { %s1146_s11 = scalar_lea.vmem %s1266_s29, 1024  ;;  %s1197_s12 = smov [#allocation2]  }
  0x1a   : > { %p1147_p6 = scmp.ne.s32.totalorder %s1266_s29, %s1146_s11  ;;  %s1151_s18 = sshll.u32 %s1197_s12, 4  ;;  %s1152_s18 = int_to_ptr.vmem [resolvable:$false] %s1151_s18 }
  0x1b   : > { %s1153_s19 = scalar_lea.vmem %s1152_s18, 2048  ;;  %p1154_p9 = scmp.lt.s32.totalorder %s1266_s29, %s1152_s18 }
  0x1c   : > { %p1149_p10 = pnand %p1147_p6, %p1133_p11  ;;  %p1155_p0 = scmp.lt.s32.totalorder %s1153_s19, %s1146_s11 }
  0x1e   : > { %p1150_p12 = pneg %p1149_p10  ;;  %p1156_p1 = por %p1155_p0, %p1154_p9 }
  0x20   : > { %p1157_p2 = pnand %p1156_p1, %p1150_p12 }
  0x22   : > { %1160 = shalt.err (!%p1157_p2)
}
  0x23   : > { %s1198_s22 = smov 128   ;;  %s1199_s23 = smov 8  }
  0x24   : > { %1095 = dma.hbm_to_vmem [thread:$0]  (!%p1268_p8), %s1264_s27, 1024, %s1266_s29, %s1273_s4, %s1198_s22, %s1198_s22, %s1199_s23  }
  0x25   : > { %p154_p11 = scmp.lt.s32.totalorder %s1195_s15, 3  ;;  %p1365_p13 = scmp.ge.s32.totalorder %s1195_s15, 1 }
  0x27   : > { %p155_p3 = pnand %p1365_p13, %p154_p11 }
  0x28   : > { %s160_s24 = sand.u32 (!%p155_p3), 1, %s1187_s13  }
  0x29   : > { %158 = sbr.rel (%p155_p3) target bundleno = 501 (0x1f5), region = 32  ;;  %s933_s25 = sshll.u32 (!%p155_p3), %s160_s24, 6 }
  0x2a   : > { %s161_s26 = scalar_lea.sflag (!%p155_p3), [#allocation3], %s160_s24  ;;  %s164_s28 = scalar_lea.vmem (!%p155_p3), [#allocation2], %s933_s25 }
  0x30   : > { %1178 = dma.done.wait (%p1255_p7), %s161_s26, 1024  }
  0x31   : > { %1180 = vsyncadd (%p1255_p7), %s161_s26, 4294966272  ;;  %vm202_vm0 = vcmask 130048   ;;  %v196_v0 = vld [vmem:[%s1361_s2] sm:$0xff]  ;;  %v197_v1 = vld [vmem:[%s1361_s2 + $0x8] sm:$0xff]  ;;  %s934_s8 = sshll.u32 %s924_s16, 2  ;;  %vm367_vm1 = vcmask 93184  }
  0x32   : > { %v200_v2 = vld [vmem:[%s164_s28] sm:$0xff]  ;;  %v1058_v3 = vpack.c.bf16 %v197_v1, %v196_v0  ;;  %v201_v4 = vld [vmem:[%s164_s28 + $0x8] sm:$0xff]  ;;  %v941_v5 = vld [vmem:[%s164_s28 + $0x10] sm:$0xff]  ;;  %p190_p7 = scmp.lt.s32.totalorder %s934_s8, 7  ;;  %vm365_vm2 = vcmask 97280  }
  0x33   : > { %1006 = vmatprep.mubr.msk.f32.mxu0 %vm202_vm0, %v200_v2  ;;  %v942_v6 = vld [vmem:[%s164_s28 + $0x18] sm:$0xff]  ;;  %v949_v7 = vld [vmem:[%s164_s28 + $0x20] sm:$0xff]  ;;  %v950_v8 = vld [vmem:[%s164_s28 + $0x28] sm:$0xff] }
  0x34   : > { %1059 = vmatprep.subr.bf16.mxu0 %v1058_v3  ;;  %v957_v9 = vld [vmem:[%s164_s28 + $0x30] sm:$0xff]  ;;  %v958_v10 = vld [vmem:[%s164_s28 + $0x38] sm:$0xff]  ;;  %v198_v11 = vld [vmem:[%s1360_s1] sm:$0xff]  ;;  %s1371_s8 = smov (!%p190_p7, %s934_s8), 7 }
  0x35   : > { %1061 = vmatpush3.bf16.msra.mxu0 %v1058_v3  ;;  %1013 = vmatprep.mubr.msk.f32.mxu1 %vm202_vm0, %v198_v11  ;;  %v199_v17 = vld [vmem:[%s1360_s1 + $0x8] sm:$0xf]  ;;  %s969_s9 = sshll.u32 %s1371_s8, 4 }
  0x36   : > { %1067 = vmatprep.subr.bf16.mxu0 %v1058_v3  ;;  %s194_s12 = scalar_lea.vmem %s1362_s3, %s969_s9 }
  0x38   : > { %1007 = vmatmul.mubr.msk.f32.vlgmr.msra.gmra.mrb[0].mxu0 %vm202_vm0, %v201_v4 }
  0x39   : > { %1069 = vmatpush3.bf16.msra.mxu0 %v1058_v3  ;;  %1020 = vmatprep.mubr.msk.f32.mxu0 %vm202_vm0, %v941_v5 }
  0x3a   : > { %1075 = vmatprep.subr.bf16.mxu0 %v1058_v3 }
  0x3c   : > { %1021 = vmatmul.mubr.msk.f32.vlgmr.msra.gmra.mrb[2].mxu0 %vm202_vm0, %v942_v6 }
  0x3d   : > { %1077 = vmatpush3.bf16.msra.mxu0 %v1058_v3  ;;  %1034 = vmatprep.mubr.msk.f32.mxu0 %vm202_vm0, %v949_v7 }
  0x3e   : > { %1083 = vmatprep.subr.bf16.mxu0 %v1058_v3 }
  0x40   : > { %1035 = vmatmul.mubr.msk.f32.vlgmr.msra.gmra.mrb[4].mxu0 %vm202_vm0, %v950_v8 }
  0x41   : > { %1085 = vmatpush3.bf16.msra.mxu0 %v1058_v3  ;;  %1048 = vmatprep.mubr.msk.f32.mxu0 %vm202_vm0, %v957_v9 }
  0x44   : > { %1049 = vmatmul.mubr.msk.f32.vlgmr.msra.gmra.mrb[6].mxu0 %vm202_vm0, %v958_v10 }
 0x10b   : > { %v1008_v12 = vpop.f32.mrb[0].mxu0 }
 0x10c   : > { %v275_v13 = vpop.f32.mrb[1].mxu0 }
 0x10d   : > { %v1062_v14 = vpack.c.bf16 %v1008_v12, %v275_v13 }
 0x10f   : > { %1063 = vmatprep.subr.bf16.mxu1 %v1062_v14  ;;  %v1022_v15 = vpop.f32.mrb[2].mxu0 }
 0x110   : > { %1065 = vmatpush3.bf16.msra.mxu1 %v1062_v14  ;;  %v444_v16 = vpop.f32.mrb[3].mxu0 }
 0x111   : > { %v1070_v18 = vpack.c.bf16 %v1022_v15, %v444_v16 }
 0x113   : > { %1014 = vmatmul.mubr.msk.f32.vlgmr.msra.gmra.mrb[0].mxu1 %vm202_vm0, %v199_v17  ;;  %1071 = vmatprep.subr.bf16.mxu1 %v1070_v18  ;;  %v1036_v19 = vpop.f32.mrb[4].mxu0 }
 0x114   : > { %1073 = vmatpush3.bf16.msra.mxu1 %v1070_v18  ;;  %v606_v20 = vpop.f32.mrb[5].mxu0  ;;  %1027 = vmatprep.mubr.msk.f32.mxu1 %vm202_vm0, %v198_v11 }
 0x115   : > { %v1078_v21 = vpack.c.bf16 %v1036_v19, %v606_v20 }
 0x117   : > { %1028 = vmatmul.mubr.msk.f32.vlgmr.msra.gmra.mrb[2].mxu1 %vm202_vm0, %v199_v17  ;;  %1079 = vmatprep.subr.bf16.mxu1 %v1078_v21  ;;  %v1050_v22 = vpop.f32.mrb[6].mxu0 }
 0x118   : > { %1081 = vmatpush3.bf16.msra.mxu1 %v1078_v21  ;;  %v768_v23 = vpop.f32.mrb[7].mxu0  ;;  %1041 = vmatprep.mubr.msk.f32.mxu1 %vm202_vm0, %v198_v11 }
 0x119   : > { %v1086_v24 = vpack.c.bf16 %v1050_v22, %v768_v23 }
 0x11b   : > { %1042 = vmatmul.mubr.msk.f32.vlgmr.msra.gmra.mrb[4].mxu1 %vm202_vm0, %v199_v17  ;;  %1087 = vmatprep.subr.bf16.mxu1 %v1086_v24 }
 0x11c   : > { %1089 = vmatpush3.bf16.msra.mxu1 %v1086_v24  ;;  %1055 = vmatprep.mubr.msk.f32.mxu1 %vm202_vm0, %v198_v11 }
 0x11f   : > { %1056 = vmatmul.mubr.msk.f32.vlgmr.msra.gmra.mrb[6].mxu1 %vm202_vm0, %v199_v17 }
 0x1e6   : > { %v1015_v25 = vpop.f32.mrb[0].mxu1 }
 0x1e7   : > { %368 = vst.msk [vmem:[%s194_s12 + $0x8] sm:$0xf] %vm367_vm1, %v1015_v25  ;;  %v356_v26 = vpop.f32.mrb[1].mxu1 }
 0x1e8   : > { %366 = vst.msk [vmem:[%s194_s12] sm:$0xff] %vm365_vm2, %v356_v26 }
 0x1ea   : > { %v1029_v27 = vpop.f32.mrb[2].mxu1 }
 0x1eb   : > { %948 = vst.msk [vmem:[%s194_s12 + $0x18] sm:$0xf] %vm367_vm1, %v1029_v27  ;;  %v519_v28 = vpop.f32.mrb[3].mxu1 }
 0x1ec   : > { %947 = vst.msk [vmem:[%s194_s12 + $0x10] sm:$0xff] %vm365_vm2, %v519_v28 }
 0x1ee   : > { %v1043_v29 = vpop.f32.mrb[4].mxu1 }
 0x1ef   : > { %956 = vst.msk [vmem:[%s194_s12 + $0x28] sm:$0xf] %vm367_vm1, %v1043_v29  ;;  %v681_v30 = vpop.f32.mrb[5].mxu1 }
 0x1f0   : > { %955 = vst.msk [vmem:[%s194_s12 + $0x20] sm:$0xff] %vm365_vm2, %v681_v30 }
 0x1f2   : > { %v1057_v31 = vpop.f32.mrb[6].mxu1 }
 0x1f3   : > { %964 = vst.msk [vmem:[%s194_s12 + $0x38] sm:$0xf] %vm367_vm1, %v1057_v31  ;;  %v843_v32 = vpop.f32.mrb[7].mxu1 }
 0x1f4   : > { %963 = vst.msk [vmem:[%s194_s12 + $0x30] sm:$0xff] %vm365_vm2, %v843_v32 }
 0x1f5 PF: > { %p13_p8 = scmp.ge.s32.totalorder %s1240_s17, 4   ;;  %s1366_s12 = smov %s1187_s13 }
 0x1f6   : > { %s1367_s13 = smov %s1191_s14  ;;  %s1368_s14 = smov %s1250_s20 }
 0x1f7   : > { %s1369_s15 = smov %s1240_s17  ;;  %15 = sbr.rel (!%p13_p8) target bundleno = 3 (0x3), region = 78 }
 0x1fe   :  { %879 = vsyncpa [#allocation3], 1 }
 0x1ff   :  { %881 = vsyncpa [#allocation3 + $0x1], 1 }

</bundles_post_ra>
